<compile_context>
chip_gen: v6e
topology: v6e:2x2x1
jax: 0.10.0
libtpu: 0.0.40
codegen_flags: <defaults>
</compile_context>

<pallas_src>
import numpy as np

import jax
import jax.numpy as jnp
from jax.experimental import pallas as pl
from jax.experimental.pallas import tpu as pltpu


def _identity_kernel(x_ref, o_ref):
    # Straight tile copy: VMEM in -> VMEM out.
    o_ref[...] = x_ref[...]


def _choose_lane(total):
    """Largest lane width (multiple of 128, <= 2048) that divides `total`."""
    for n in (2048, 1024, 512, 256, 128):
        if total % n == 0:
            return n
    return None


def _choose_rows(m, max_rows):
    """Pick a row tile.

    Prefers the largest multiple-of-8 divisor of `m` that is <= max_rows
    (exact grid, no partial blocks).  If `m` fits in one tile, use it whole
    (block dim == full array dim is always legal).  Otherwise fall back to a
    cdiv grid with a multiple-of-8 tile; Pallas masks the partial last block.
    Returns (tile_m, grid_m).
    """
    max_rows = max(8, int(max_rows))
    if m <= max_rows:
        return m, 1
    d = (max_rows // 8) * 8
    while d >= 8:
        if m % d == 0:
            return d, m // d
        d -= 8
    d = (max_rows // 8) * 8
    return d, pl.cdiv(m, d)


def identity_unpool(x, indices_spa=None, indices_sph=None, *,
                    target_block_bytes=4 * 1024 * 1024,
                    vmem_limit_bytes=48 * 1024 * 1024):
    """Pallas implementation of IdentityUnPooling_.forward.

    Args:
      x: array of shape [B, Fin, V, X, Y, Z] (any dtype).
      indices_spa, indices_sph: ignored (matching the PyTorch module).
    Returns:
      Array identical to x (same shape, dtype, values).
    """
    del indices_spa, indices_sph  # unused, as in the reference module
    orig_shape = x.shape
    dtype = x.dtype
    itemsize = jnp.dtype(dtype).itemsize
    total = int(np.prod(orig_shape)) if len(orig_shape) else 1

    # Lane-dense flattening: last dim a large multiple of 128 when possible.
    n = _choose_lane(total)
    if n is None:
        # No 128-multiple divides the element count; keep the original trailing
        # axis as the lane axis (block last dim == full array last dim is legal).
        n = orig_shape[-1] if len(orig_shape) else 1
    m = total // n
    x2 = x.reshape(m, n)

    # Block sized to ~target_block_bytes; in + out, each double-buffered,
    # stays far below the scoped VMEM limit even on v7x (64 MiB physical).
    max_rows = max(8, target_block_bytes // max(1, n * itemsize))
    tile_m, grid_m = _choose_rows(m, max_rows)

    out2 = pl.pallas_call(
        _identity_kernel,
        out_shape=jax.ShapeDtypeStruct((m, n), dtype),
        grid=(grid_m,),
        in_specs=[pl.BlockSpec((tile_m, n), lambda i: (i, 0))],
        out_specs=pl.BlockSpec((tile_m, n), lambda i: (i, 0)),
        cost_estimate=pl.CostEstimate(
            flops=0,
            transcendentals=0,
            bytes_accessed=2 * total * itemsize,
        ),
        compiler_params=pltpu.CompilerParams(
            dimension_semantics=("parallel",),
            vmem_limit_bytes=vmem_limit_bytes,
        ),
    )(x2)

    return out2.reshape(orig_shape)


if __name__ == "__main__":
    key = jax.random.PRNGKey(0)
    k_x, k_spa, k_sph = jax.random.split(key, 3)

    # [B x Fin x V x X x Y x Z] — small synthetic shapes.
    B, Fin, V, X, Y, Z = 2, 4, 8, 4, 4, 4
    x = jax.random.normal(k_x, (B, Fin, V, X, Y, Z), dtype=jnp.float32)

    # Dummy indices (unused by the identity un-pooling, as in PyTorch).
    indices_spa = jax.random.randint(k_spa, (B, Fin, V), 0, V)
    indices_sph = jax.random.randint(k_sph, (B, Fin, X, Y, Z), 0, X)

    out = identity_unpool(x, indices_spa, indices_sph)
    out = jax.block_until_ready(out)

    assert out.shape == x.shape, (out.shape, x.shape)
    assert out.dtype == x.dtype, (out.dtype, x.dtype)
    np.testing.assert_array_equal(np.asarray(out), np.asarray(x))

    print("KERNEL_OK")
</pallas_src>

<mosaic_0001>
module attributes {stable_mosaic.version = 11 : i64} {
  func.func @_identity_kernel(%arg0: i32, %arg1: memref<2x2048xf32, #tpu.memory_space<vmem>>, %arg2: memref<2x2048xf32, #tpu.memory_space<vmem>>) attributes {dimension_semantics = [#tpu.dimension_semantics<parallel>], iteration_bounds = array<i64: 1>, scalar_prefetch = 0 : i64, scratch_operands = 0 : i64, tpu.core_type = #tpu.core_type<tc>, window_params = [{transform_indices = @transform_0, window_bounds = array<i64: 2, 2048>}, {transform_indices = @transform_1, window_bounds = array<i64: 2, 2048>}]} {
    %c0 = arith.constant 0 : index
    %c0_0 = arith.constant 0 : index
    %0 = vector.load %arg1[%c0, %c0_0] : memref<2x2048xf32, #tpu.memory_space<vmem>>, vector<2x2048xf32>
    %c0_1 = arith.constant 0 : index
    %c0_2 = arith.constant 0 : index
    %1 = vector.load %arg2[%c0_1, %c0_2] : memref<2x2048xf32, #tpu.memory_space<vmem>>, vector<2x2048xf32>
    tpu.vector_store %arg2[%c0_1, %c0_2], %0 {strides = array<i32>} : memref<2x2048xf32, #tpu.memory_space<vmem>>, vector<2x2048xf32>,
    return
  }
  func.func @transform_0(%arg0: i32) -> (i32, i32) {
    %c0_i32 = arith.constant 0 : i32
    %c0_i32_0 = arith.constant 0 : i32
    return %arg0, %c0_i32 : i32, i32
  }
  func.func @transform_1(%arg0: i32) -> (i32, i32) {
    %c0_i32 = arith.constant 0 : i32
    %c0_i32_0 = arith.constant 0 : i32
    return %arg0, %c0_i32 : i32, i32
  }
}

</mosaic_0001>

<bundles_post_ra>
// kernel: tpu_custom_call.1
= control target key start
LH: loop header
LB: loop body
LE: loop exit
PB: predicated region body
PF: predicated region fallthrough
CT: control target
= control target key end

     0   :  { %6 = vsyncpa [#allocation3], 0  ;;  %s108_s0 = inlined_call_operand.hbm [shape: f32[2,2048], index: 0, kind: input, shape index: {}]   ;;  %s109_s1 = inlined_call_operand.hbm [shape: f32[2,2048], index: 1, kind: output, shape index: {}]  }
   0x1   :  { %7 = vsyncpa [#allocation4], 0  ;;  %s90_s6 = smov [#allocation2]  }
   0x2   :  { %s14_s7 = sshll.u32 %s90_s6, 4  ;;  %s15_s7 = int_to_ptr.vmem [resolvable:$true] %s14_s7 }
   0x3   :  { %s54_s8 = scalar_lea.vmem %s15_s7, 512  ;;  %p59_p1 = scmp.lt.s32.totalorder %s15_s7, %s15_s7 }
   0x4   :  { %p55_p0 = scmp.ne.s32.totalorder %s15_s7, %s54_s8  ;;  %p60_p2 = scmp.lt.s32.totalorder %s54_s8, %s54_s8 }
   0x6   :  { %p61_p3 = por %p60_p2, %p59_p1 }
   0x8   :  { %p62_p4 = pnand %p61_p3, %p55_p0 }
   0xa   :  { %65 = shalt.err (!%p62_p4)
}
   0xb   :  { %17 = dma.hbm_to_vmem [thread:$0]  %s108_s0, 512, %s15_s7, [#allocation3]  }
   0xc   :  { %86 = dma.done.wait [#allocation3], 512  }
   0xd   :  { %87 = vsyncadd [#allocation3], 4294966784  ;;  %s91_s11 = smov [#allocation5]   ;;  %v21_v0 = vld [vmem:[#allocation2] sm:$0xff]  ;;  %v22_v1 = vld [vmem:[#allocation2 + $0x8] sm:$0xff] }
   0xe   :  { %s35_s12 = sshll.u32 %s91_s11, 4  ;;  %v23_v2 = vld [vmem:[#allocation2 + $0x10] sm:$0xff]  ;;  %25 = vst [vmem:[#allocation5] sm:$0xff] %v21_v0  ;;  %26 = vst [vmem:[#allocation5 + $0x8] sm:$0xff] %v22_v1  ;;  %v24_v3 = vld [vmem:[#allocation2 + $0x18] sm:$0xff]  ;;  %s36_s12 = int_to_ptr.vmem [resolvable:$true] %s35_s12 }
   0xf   :  { %27 = vst [vmem:[#allocation5 + $0x10] sm:$0xff] %v23_v2  ;;  %28 = vst [vmem:[#allocation5 + $0x18] sm:$0xff] %v24_v3  ;;  %s66_s13 = scalar_lea.vmem %s36_s12, 512  ;;  %p71_p6 = scmp.lt.s32.totalorder %s36_s12, %s36_s12 }
  0x10   :  { %p67_p5 = scmp.ne.s32.totalorder %s36_s12, %s66_s13  ;;  %p72_p7 = scmp.lt.s32.totalorder %s66_s13, %s66_s13 }
  0x12   :  { %p73_p8 = por %p72_p7, %p71_p6 }
  0x14   :  { %p74_p9 = pnand %p73_p8, %p67_p5 }
  0x16   :  { %77 = shalt.err (!%p74_p9)
}
  0x17   :  { %38 = dma.vmem_to_hbm [thread:$0]  %s36_s12, 512, %s109_s1, [#allocation4]  }
  0x18   :  { %88 = dma.done.wait [#allocation4], 512  }
  0x19   :  { %89 = vsyncadd [#allocation4], 4294966784 }
  0x1a   :  { %42 = vsyncpa [#allocation3], 1 }
  0x1b   :  { %43 = vsyncpa [#allocation4], 1 }

</bundles_post_ra>
